<compile_context>
chip_gen: v7x
topology: tpu7x:2x2x1
jax: 0.10.0
libtpu: 0.0.40
codegen_flags: <defaults>
</compile_context>

<pallas_src>
import functools

import jax
import jax.numpy as jnp
from jax.experimental import pallas as pl
from jax.experimental.pallas import tpu as pltpu

_LANE = 128
_SUBLANE = 8
_VMEM_LIMIT = 32 * 1024 * 1024          # explicit scoped-VMEM limit (portable v5e/v6e/v7x)
_FUSED_SLAB_BYTES = 2 * 1024 * 1024     # per-batch slab budget for the single-pass path
_TILE_BUDGET_BYTES = 2 * 1024 * 1024    # per-tile budget for the streaming fallback


def _round_up(v, m):
    return (v + m - 1) // m * m


def _excite(pooled, w1, w2):
    """Tiny SE MLP: sigmoid(w2 @ relu(w1 @ pooled)); pooled is (C, 1) f32."""
    hid = jnp.dot(w1, pooled, preferred_element_type=jnp.float32)   # (Hp, C) @ (C, 1)
    hid = jnp.maximum(hid, 0.0)
    s = jnp.dot(w2, hid, preferred_element_type=jnp.float32)        # (C, Hp) @ (Hp, 1)
    return jax.nn.sigmoid(s)                                        # (C, 1)


def _fused_kernel(x_ref, w1_ref, w2_ref, o_ref, *, inv_hw):
    # x_ref/o_ref: (1, C, HW); w1_ref: (Hp, C); w2_ref: (C, Hp).
    xf = x_ref[...].astype(jnp.float32)
    pooled = jnp.sum(xf, axis=-1, keepdims=True) * inv_hw           # (1, C, 1)
    scale = _excite(pooled[0], w1_ref[...], w2_ref[...])            # (C, 1)
    o_ref[...] = (xf * scale[None]).astype(o_ref.dtype)


def _pool_mlp_kernel(x_ref, w1_ref, w2_ref, scale_ref, *, inv_hw, hw, thw, needs_mask):
    # x_ref: (1, C, thw); scale_ref: (1, C, 1) f32, resident over the HW grid axis.
    h = pl.program_id(1)

    @pl.when(h == 0)
    def _():
        scale_ref[...] = jnp.zeros_like(scale_ref)

    xf = x_ref[...].astype(jnp.float32)
    if needs_mask:
        lane = jax.lax.broadcasted_iota(jnp.int32, xf.shape, 2)
        xf = jnp.where(lane + h * thw < hw, xf, 0.0)   # zero the ragged-tile garbage
    scale_ref[...] += jnp.sum(xf, axis=-1, keepdims=True)

    @pl.when(h == pl.num_programs(1) - 1)
    def _():
        pooled = scale_ref[...][0] * inv_hw                                  # (C, 1)
        scale_ref[...] = _excite(pooled, w1_ref[...], w2_ref[...])[None]


def _apply_kernel(x_ref, s_ref, o_ref):
    # Multiply in f32, cast once at the store (avoids double-rounding for bf16).
    # OOB lanes of a ragged last output tile are dropped by Pallas -> no mask.
    o_ref[...] = (x_ref[...].astype(jnp.float32) * s_ref[...]).astype(o_ref.dtype)


def se_forward(x, w1, w2, *, fused_slab_bytes=_FUSED_SLAB_BYTES,
               tile_budget_bytes=_TILE_BUDGET_BYTES):
    """SELayer forward. x: (N, C, H, W); w1: (C//r, C); w2: (C, C//r)."""
    N, C, H, W = x.shape
    hidden = w1.shape[0]
    assert w1.shape == (hidden, C) and w2.shape == (C, hidden)

    HW = H * W
    itemsize = jnp.dtype(x.dtype).itemsize
    inv_hw = 1.0 / HW

    # Weights in their native layouts; pad `hidden` to a multiple of 8 (zero
    # rows/cols contribute nothing through ReLU).
    Hp = max(_SUBLANE, _round_up(hidden, _SUBLANE))
    w1p = jnp.zeros((Hp, C), jnp.float32).at[:hidden].set(w1.astype(jnp.float32))
    w2p = jnp.zeros((C, Hp), jnp.float32).at[:, :hidden].set(w2.astype(jnp.float32))

    x3 = x.reshape(N, C, HW)
    slab_bytes = C * HW * itemsize

    if slab_bytes <= fused_slab_bytes:
        # ---- Fused single-pass path: pool + MLP + scale per batch element -------
        out3 = pl.pallas_call(
            functools.partial(_fused_kernel, inv_hw=inv_hw),
            out_shape=jax.ShapeDtypeStruct((N, C, HW), x.dtype),
            grid_spec=pltpu.PrefetchScalarGridSpec(
                num_scalar_prefetch=0,
                grid=(N,),
                in_specs=[
                    pl.BlockSpec((1, C, HW), lambda n: (n, 0, 0)),
                    pl.BlockSpec((Hp, C), lambda n: (0, 0)),
                    pl.BlockSpec((C, Hp), lambda n: (0, 0)),
                ],
                out_specs=pl.BlockSpec((1, C, HW), lambda n: (n, 0, 0)),
            ),
            compiler_params=pltpu.CompilerParams(
                dimension_semantics=("parallel",),
                vmem_limit_bytes=_VMEM_LIMIT),
            cost_estimate=pl.CostEstimate(
                flops=2 * N * C * HW + 4 * N * C * Hp,
                transcendentals=N * C,
                bytes_accessed=2 * N * C * HW * itemsize),
        )(x3, w1p, w2p)
        return out3.reshape(N, C, H, W)

    # ---- Two-pass streaming fallback (large slabs) -------------------------------
    # Lane-dense spatial tiles sized by a byte budget; no host-side padding of x.
    max_lanes = max(_LANE, (tile_budget_bytes // (C * itemsize)) // _LANE * _LANE)
    if max_lanes >= HW:
        thw = HW                    # single full-extent tile (any size allowed)
    else:
        thw = max_lanes             # multiple of 128, strictly < HW
    nhw = pl.cdiv(HW, thw)
    needs_mask = (HW % thw) != 0

    # Pass 1: global-average pool over HW + excitation MLP in the finalize branch.
    scale = pl.pallas_call(
        functools.partial(_pool_mlp_kernel, inv_hw=inv_hw, hw=HW, thw=thw,
                          needs_mask=needs_mask),
        out_shape=jax.ShapeDtypeStruct((N, C, 1), jnp.float32),
        grid_spec=pltpu.PrefetchScalarGridSpec(
            num_scalar_prefetch=0,
            grid=(N, nhw),                                   # reduction axis last
            in_specs=[
                pl.BlockSpec((1, C, thw), lambda n, h: (n, 0, h)),
                pl.BlockSpec((Hp, C), lambda n, h: (0, 0)),
                pl.BlockSpec((C, Hp), lambda n, h: (0, 0)),
            ],
            out_specs=pl.BlockSpec((1, C, 1), lambda n, h: (n, 0, 0)),
        ),
        compiler_params=pltpu.CompilerParams(
            dimension_semantics=("parallel", "arbitrary"),
            vmem_limit_bytes=_VMEM_LIMIT),
        cost_estimate=pl.CostEstimate(
            flops=N * C * HW, transcendentals=N * C,
            bytes_accessed=N * C * HW * itemsize + N * C * 4),
    )(x3, w1p, w2p)

    # Pass 2: out = x * scale (scale block resident over the HW axis).
    out3 = pl.pallas_call(
        _apply_kernel,
        out_shape=jax.ShapeDtypeStruct((N, C, HW), x.dtype),
        grid_spec=pltpu.PrefetchScalarGridSpec(
            num_scalar_prefetch=0,
            grid=(N, nhw),
            in_specs=[
                pl.BlockSpec((1, C, thw), lambda n, h: (n, 0, h)),
                pl.BlockSpec((1, C, 1), lambda n, h: (n, 0, 0)),
            ],
            out_specs=pl.BlockSpec((1, C, thw), lambda n, h: (n, 0, h)),
        ),
        compiler_params=pltpu.CompilerParams(
            dimension_semantics=("parallel", "parallel"),
            vmem_limit_bytes=_VMEM_LIMIT),
        cost_estimate=pl.CostEstimate(
            flops=N * C * HW, transcendentals=0,
            bytes_accessed=2 * N * C * HW * itemsize + N * C * 4),
    )(x3, scale)
    return out3.reshape(N, C, H, W)


def se_reference(x, w1, w2):
    y = jnp.mean(x.astype(jnp.float32), axis=(2, 3))
    y = jnp.maximum(y @ w1.T.astype(jnp.float32), 0.0)
    y = jax.nn.sigmoid(y @ w2.T.astype(jnp.float32))
    return (x.astype(jnp.float32) * y[:, :, None, None]).astype(x.dtype)


if __name__ == "__main__":
    key = jax.random.PRNGKey(0)
    kx, k1, k2 = jax.random.split(key, 3)

    # Main case: f32, exercises the fused single-pass path (slab fits VMEM).
    N, C, H, W = 2, 32, 16, 16
    reduction = 16
    hidden = max(C // reduction, 1)   # Linear(C, C//r) requires C >= r

    x = jax.random.normal(kx, (N, C, H, W), dtype=jnp.float32)
    w1 = jax.random.normal(k1, (hidden, C), dtype=jnp.float32) * 0.1
    w2 = jax.random.normal(k2, (C, hidden), dtype=jnp.float32) * 0.1

    out = jax.block_until_ready(jax.jit(se_forward)(x, w1, w2))
    ref = se_reference(x, w1, w2)
    assert out.shape == (N, C, H, W)
    assert jnp.allclose(out, ref, atol=2e-3, rtol=2e-3), "fused path mismatch"

    # Secondary case: bf16 activations, non-128-multiple HW, tiny tile budget to
    # force the two-pass streaming path with a ragged (masked) last HW tile.
    Hb, Wb = 20, 20
    xb = jax.random.normal(kx, (1, C, Hb, Wb), dtype=jnp.bfloat16)
    two_pass = functools.partial(se_forward, fused_slab_bytes=0,
                                 tile_budget_bytes=16 * 1024)
    outb = jax.block_until_ready(jax.jit(two_pass)(xb, w1, w2))
    refb = se_reference(xb, w1, w2)
    assert outb.shape == xb.shape
    assert jnp.allclose(outb.astype(jnp.float32), refb.astype(jnp.float32),
                        atol=2e-2, rtol=2e-2), "two-pass path mismatch"

    print("KERNEL_OK")
</pallas_src>

<mosaic_0001>
module attributes {stable_mosaic.version = 11 : i64} {
  func.func @_fused_kernel(%arg0: i32, %arg1: memref<1x32x256xf32, #tpu.memory_space<vmem>>, %arg2: memref<8x32xf32, #tpu.memory_space<vmem>>, %arg3: memref<32x8xf32, #tpu.memory_space<vmem>>, %arg4: memref<1x32x256xf32, #tpu.memory_space<vmem>>) attributes {dimension_semantics = [#tpu.dimension_semantics<parallel>], iteration_bounds = array<i64: 2>, scalar_prefetch = 0 : i64, scratch_operands = 0 : i64, tpu.core_type = #tpu.core_type<tc>, window_params = [{transform_indices = @transform_0, window_bounds = array<i64: 1, 32, 256>}, {pipeline_mode = #tpu.pipeline_mode<synchronous>, transform_indices = @transform_1, window_bounds = array<i64: 8, 32>}, {pipeline_mode = #tpu.pipeline_mode<synchronous>, transform_indices = @transform_2, window_bounds = array<i64: 32, 8>}, {transform_indices = @transform_3, window_bounds = array<i64: 1, 32, 256>}]} {
    %c0 = arith.constant 0 : index
    %c0_0 = arith.constant 0 : index
    %c0_1 = arith.constant 0 : index
    %0 = vector.load %arg1[%c0, %c0_0, %c0_1] : memref<1x32x256xf32, #tpu.memory_space<vmem>>, vector<1x32x256xf32>
    %cst = arith.constant dense<0.000000e+00> : vector<1x32xf32>
    %1 = vector.multi_reduction <add>, %0, %cst [2] : vector<1x32x256xf32> to vector<1x32xf32>
    %2 = vector.shape_cast %1 : vector<1x32xf32> to vector<1x32x1xf32>
    %cst_2 = arith.constant 3.906250e-03 : f32
    %3 = vector.broadcast %cst_2 : f32 to vector<1x32x1xf32>
    %4 = arith.mulf %2, %3 : vector<1x32x1xf32>
    %5 = vector.shape_cast %4 : vector<1x32x1xf32> to vector<32x1xf32>
    %c0_3 = arith.constant 0 : index
    %c0_4 = arith.constant 0 : index
    %6 = vector.load %arg2[%c0_3, %c0_4] : memref<8x32xf32, #tpu.memory_space<vmem>>, vector<8x32xf32>
    %c0_5 = arith.constant 0 : index
    %c0_6 = arith.constant 0 : index
    %7 = vector.load %arg3[%c0_5, %c0_6] : memref<32x8xf32, #tpu.memory_space<vmem>>, vector<32x8xf32>
    %cst_7 = arith.constant dense<0.000000e+00> : vector<8x1xf32>
    %8 = tpu.matmul %6, %5, %cst_7 {dimension_numbers = #tpu.dot_dimension_numbers<[1], [0], [0], [1], [0, 0, 1, 1], [], []>} : vector<8x32xf32>, vector<32x1xf32>, vector<8x1xf32> -> vector<8x1xf32>
    %cst_8 = arith.constant 0.000000e+00 : f32
    %9 = vector.broadcast %cst_8 : f32 to vector<8x1xf32>
    %10 = arith.maximumf %8, %9 : vector<8x1xf32>
    %cst_9 = arith.constant dense<0.000000e+00> : vector<32x1xf32>
    %11 = tpu.matmul %7, %10, %cst_9 {dimension_numbers = #tpu.dot_dimension_numbers<[1], [0], [0], [1], [0, 0, 1, 1], [], []>} : vector<32x8xf32>, vector<8x1xf32>, vector<32x1xf32> -> vector<32x1xf32>
    %12 = arith.negf %11 : vector<32x1xf32>
    %13 = math.exp %12 : vector<32x1xf32>
    %cst_10 = arith.constant 1.000000e+00 : f32
    %14 = vector.broadcast %cst_10 : f32 to vector<32x1xf32>
    %15 = arith.addf %14, %13 : vector<32x1xf32>
    %16 = arith.divf %14, %15 : vector<32x1xf32>
    %17 = vector.shape_cast %16 : vector<32x1xf32> to vector<1x32x1xf32>
    %18 = vector.broadcast %17 : vector<1x32x1xf32> to vector<1x32x256xf32>
    %19 = arith.mulf %0, %18 : vector<1x32x256xf32>
    %c0_11 = arith.constant 0 : index
    %c0_12 = arith.constant 0 : index
    %c0_13 = arith.constant 0 : index
    %20 = vector.load %arg4[%c0_11, %c0_12, %c0_13] : memref<1x32x256xf32, #tpu.memory_space<vmem>>, vector<1x32x256xf32>
    tpu.vector_store %arg4[%c0_11, %c0_12, %c0_13], %19 {strides = array<i32>} : memref<1x32x256xf32, #tpu.memory_space<vmem>>, vector<1x32x256xf32>,
    return
  }
  func.func @transform_0(%arg0: i32) -> (i32, i32, i32) {
    %c0_i32 = arith.constant 0 : i32
    %c0_i32_0 = arith.constant 0 : i32
    %c0_i32_1 = arith.constant 0 : i32
    return %arg0, %c0_i32, %c0_i32_0 : i32, i32, i32
  }
  func.func @transform_1(%arg0: i32) -> (i32, i32) {
    %c0_i32 = arith.constant 0 : i32
    %c0_i32_0 = arith.constant 0 : i32
    %c0_i32_1 = arith.constant 0 : i32
    return %c0_i32, %c0_i32_0 : i32, i32
  }
  func.func @transform_2(%arg0: i32) -> (i32, i32) {
    %c0_i32 = arith.constant 0 : i32
    %c0_i32_0 = arith.constant 0 : i32
    %c0_i32_1 = arith.constant 0 : i32
    return %c0_i32, %c0_i32_0 : i32, i32
  }
  func.func @transform_3(%arg0: i32) -> (i32, i32, i32) {
    %c0_i32 = arith.constant 0 : i32
    %c0_i32_0 = arith.constant 0 : i32
    %c0_i32_1 = arith.constant 0 : i32
    return %arg0, %c0_i32, %c0_i32_0 : i32, i32, i32
  }
}

</mosaic_0001>

<bundles_post_ra>
// kernel: se_forward.1
= control target key start
LH: loop header
LB: loop body
LE: loop exit
PB: predicated region body
PF: predicated region fallthrough
CT: control target
= control target key end

     0   :  { %s607_s12 = smov 0   ;;  %s678_s0 = inlined_call_operand.vmem [shape: f32[2,32,256], index: 0, kind: input, shape index: {}]   ;;  %s679_s1 = inlined_call_operand.vmem [shape: f32[8,32], index: 1, kind: input, shape index: {}]   ;;  %s680_s2 = inlined_call_operand.vmem [shape: f32[32,8], index: 2, kind: input, shape index: {}]   ;;  %s681_s3 = inlined_call_operand.vmem [shape: f32[2,32,256], index: 3, kind: output, shape index: {}]  }
   0x1 LB: > { %s488_s13 = sadd.s32 4294967295, %s581_s12   ;;  %p492_p0 = scmp.ge.s32.totalorder %s581_s12, 1  ;;  %s581_s12 = sphi %s607_s12, %s13_s12  }
   0x2   : > { %p137_p1 = scmp.lt.s32.totalorder %s581_s12, 3 }
   0x4   : > { %p138_p2 = pnand %p492_p0, %p137_p1 }
   0x5   : > { %p161_p3 = scmp.lt.s32.totalorder (!%p138_p2), %s488_s13, 1  ;;  %v583_v12 = vmov (!%p138_p2), 0.0|0.0   ;;  %vm584_vm0 = vmmov (!%p138_p2), 0   ;;  %v585_v13 = vmov (!%p138_p2), 0.0   ;;  %v195_v24 = vld [vmem:[%s679_s1] sm:$0xff] (!%p138_p2)  ;;  %vm200_vm1 = vcmask (!%p138_p2), 261120  }
   0x6   : > { %141 = sbr.rel (%p138_p2) target bundleno = 771 (0x303), region = 32  ;;  %539 = vmatprep.subr.bf16.mxu0 (!%p138_p2), %v583_v12  ;;  %528 = vmatprep.mubr.msk.f32.mxu0 (!%p138_p2), %vm584_vm0, %v585_v13  ;;  %v196_v25 = vld [vmem:[%s680_s2] sm:$0xff] (!%p138_p2)  ;;  %vm275_vm2 = vcmask (!%p138_p2), 64512   ;;  %v197_v29 = vld [vmem:[%s680_s2 + $0x8] sm:$0xff] (!%p138_p2)  ;;  %v198_v30 = vld [vmem:[%s680_s2 + $0x10] sm:$0xff] (!%p138_p2)  ;;  %v586_v32 = vmov (!%p138_p2), 0  }
   0x7   : > { %533 = vmatprep.mubr.msk.f32.mxu1 (!%p138_p2), %vm275_vm2, %v196_v25  ;;  %v199_v31 = vld [vmem:[%s680_s2 + $0x18] sm:$0xff] (!%p138_p2)  ;;  %558 = vset.pattern.permute.xlu1 (!%p138_p2), %v586_v32 }
   0x8   : > { %557 = vset.pattern.permute.xlu0 (!%p138_p2), %v586_v32 }
   0xd   : > { %s683_s13 = smov (!%p161_p3, %s488_s13), 1 }
   0xe   : > { %s508_s14 = sshll.u32 %s683_s13, 6 }
   0xf   : > { %s165_s17 = scalar_lea.vmem %s678_s0, %s508_s14  ;;  %s170_s30 = scalar_lea.vmem %s681_s3, %s508_s14 }
  0x10   : > { %v623_v0 = vld [vmem:[%s165_s17 + $0x20] sm:$0xff]  ;;  %v625_v1 = vld [vmem:[%s165_s17 + $0x28] sm:$0xff]  ;;  %v633_v5 = vld [vmem:[%s165_s17 + $0x30] sm:$0xff] }
  0x11   : > { %v627_v2 = vld [vmem:[%s165_s17] sm:$0xff]  ;;  %v185_v3 = vadd.f32 %v625_v1, %v623_v0  ;;  %v631_v4 = vld [vmem:[%s165_s17 + $0x8] sm:$0xff]  ;;  %v635_v6 = vld [vmem:[%s165_s17 + $0x38] sm:$0xff] }
  0x12   : > { %v179_v7 = vadd.f32 %v631_v4, %v627_v2  ;;  %v639_v8 = vld [vmem:[%s165_s17 + $0x10] sm:$0xff]  ;;  %v641_v9 = vld [vmem:[%s165_s17 + $0x18] sm:$0xff]  ;;  %v188_v10 = vadd.f32 %v635_v6, %v633_v5 }
  0x13   : > { %186 = vadd.xlane.f32.xlu1 %v185_v3  ;;  %v182_v11 = vadd.f32 %v641_v9, %v639_v8 }
  0x14   : > { %180 = vadd.xlane.f32.xlu0 %v179_v7 }
  0x17   : > { %189 = vadd.xlane.f32.xlu1 %v188_v10 }
  0x18   : > { %183 = vadd.xlane.f32.xlu0 %v182_v11 }
  0xa0   : > { %v187_v14 = vpop.xlane.xlu1 %186 }
  0xa1   : > { %v181_v15 = vpop.xlane.xlu0 %180  ;;  %v193_v20 = vmul.f32 0.00390625, %v187_v14 }
  0xa2   : > { %v191_v18 = vmul.f32 0.00390625, %v181_v15 }
  0xa4   : > { %v190_v16 = vpop.xlane.xlu1 %189 }
  0xa5   : > { %v184_v17 = vpop.xlane.xlu0 %183  ;;  %v194_v21 = vmul.f32 0.00390625, %v190_v16 }
  0xa6   : > { %v192_v19 = vmul.f32 0.00390625, %v184_v17 }
  0xa7   : > { %v543_v23 = vpack.c.bf16 %v194_v21, %v193_v20 }
  0xa8   : > { %v540_v22 = vpack.c.bf16 %v192_v19, %v191_v18 }
  0xaa   : > { %541 = vmatpush3.bf16.msra.mxu0 %v540_v22 }
  0xab   : > { %542 = vmatprep.subr.bf16.mxu0 %v583_v12 }
  0xae   : > { %544 = vmatpush3.bf16.msra.mxu0 %v543_v23 }
  0xb1   : > { %529 = vmatmul.mubr.msk.f32.vlgmr.msra.gmra.mrb[0].mxu0 %vm200_vm1, %v195_v24 }
 0x184   : > { %v270_v26 = vpop.f32.mrb[0].mxu0 }
 0x185   : > { %v274_v27 = vmax.f32 %v270_v26, 0.0  ;;  %v530_v28 = vpop.f32.mrb[1].mxu0 }
 0x187   : > { %531 = vmatprep.subr.mxu1 %v274_v27 }
 0x188   : > { %532 = vmatpush3.msra.mxu1 %v274_v27 }
 0x189   : > { %534 = vmatmul.mubr.msk.f32.vlgmr.msra.gmra.mrb[0].mxu1 %vm275_vm2, %v197_v29 }
 0x18a   : > { %536 = vmatprep.mubr.msk.f32.mxu1 %vm275_vm2, %v198_v30 }
 0x18d   : > { %537 = vmatmul.mubr.msk.f32.gmra.mrb[2].mxu1 %vm275_vm2, %v199_v31 }
 0x25c   : > { %v535_v33 = vpop.f32.mrb[0].mxu1 }
 0x25d   : > { %v503_v34 = vmul.f32 -1.442695, %v535_v33  ;;  %v354_v35 = vpop.f32.mrb[1].mxu1 }
 0x25e   : > { %v502_v36 = vmul.f32 -1.442695, %v354_v35 }
 0x25f   : > { %559 = vpow2.f32 %v503_v34 }
 0x260   : > { %561 = vpow2.f32 %v502_v36  ;;  %v538_v37 = vpop.f32.mrb[2].mxu1 }
 0x261   : > { %v505_v38 = vmul.f32 -1.442695, %v538_v37  ;;  %v364_v39 = vpop.f32.mrb[3].mxu1 }
 0x262   : > { %v504_v40 = vmul.f32 -1.442695, %v364_v39 }
 0x263   : > { %563 = vpow2.f32 %v505_v38 }
 0x264   : > { %565 = vpow2.f32 %v504_v40 }
 0x269   : > { %v560_v41 = vpop.eup %559 }
 0x26a   : > { %v562_v42 = vpop.eup %561  ;;  %v386_v43 = vadd.f32 1.0, %v560_v41 }
 0x26b   : > { %v385_v44 = vadd.f32 1.0, %v562_v42 }
 0x26c   : > { %567 = vrcp.f32 %v386_v43 }
 0x26d   : > { %v564_v45 = vpop.eup %563  ;;  %569 = vrcp.f32 %v385_v44 }
 0x26e   : > { %v566_v46 = vpop.eup %565  ;;  %v388_v48 = vadd.f32 1.0, %v564_v45 }
 0x26f   : > { %v387_v47 = vadd.f32 1.0, %v566_v46 }
 0x271   : > { %571 = vrcp.f32 %v387_v47 }
 0x272   : > { %573 = vrcp.f32 %v388_v48 }
 0x276   : > { %v568_v49 = vpop.eup %567 }
 0x277   : > { %v570_v50 = vpop.eup %569  ;;  %404 = vperm.xlu1 %558, %v568_v49  }
 0x278   : > { %399 = vperm.xlu0 %557, %v570_v50  }
 0x27b   : > { %v572_v51 = vpop.eup %571 }
 0x27c   : > { %409 = vperm.xlu1 %558, %v572_v51   ;;  %v574_v52 = vpop.eup %573 }
 0x280   : > { %414 = vperm.xlu1 %558, %v574_v52  }
 0x2f6   : > { %v405_v53 = vpop.permute.xlu1 %404 }
 0x2f7   : > { %v419_v54 = vmul.f32 %v405_v53, %v639_v8  ;;  %v420_v55 = vmul.f32 %v405_v53, %v641_v9  ;;  %v400_v56 = vpop.permute.xlu0 %399 }
 0x2f8   : > { %v417_v57 = vmul.f32 %v400_v56, %v627_v2  ;;  %v418_v58 = vmul.f32 %v400_v56, %v631_v4 }
 0x2f9   : > { %427 = vst [vmem:[%s170_s30 + $0x10] sm:$0xff] %v419_v54  ;;  %428 = vst [vmem:[%s170_s30 + $0x18] sm:$0xff] %v420_v55 }
 0x2fa   : > { %425 = vst [vmem:[%s170_s30] sm:$0xff] %v417_v57  ;;  %426 = vst [vmem:[%s170_s30 + $0x8] sm:$0xff] %v418_v58 }
 0x2fb   : > { %v410_v59 = vpop.permute.xlu1 %409 }
 0x2fc   : > { %v421_v60 = vmul.f32 %v410_v59, %v623_v0  ;;  %v422_v61 = vmul.f32 %v410_v59, %v625_v1 }
 0x2fe   : > { %429 = vst [vmem:[%s170_s30 + $0x20] sm:$0xff] %v421_v60  ;;  %430 = vst [vmem:[%s170_s30 + $0x28] sm:$0xff] %v422_v61 }
 0x2ff   : > { %v415_v62 = vpop.permute.xlu1 %414 }
 0x300   : > { %v423_v63 = vmul.f32 %v415_v62, %v633_v5  ;;  %v424_v3 = vmul.f32 %v415_v62, %v635_v6 }
 0x302   : > { %431 = vst [vmem:[%s170_s30 + $0x30] sm:$0xff] %v423_v63  ;;  %432 = vst [vmem:[%s170_s30 + $0x38] sm:$0xff] %v424_v3 }
 0x303 PF: > { %s13_s12 = sadd.s32 1, %s581_s12  }
 0x304   : > { %p10_p4 = scmp.ge.s32.totalorder %s13_s12, 4  }
 0x306   :  { %12 = sbr.rel (!%p10_p4) target bundleno = 1 (0x1), region = 62 }

</bundles_post_ra>
